<compile_context>
chip_gen: v7x
topology: tpu7x:2x2x1
jax: 0.10.0
libtpu: 0.0.40
codegen_flags: <defaults>
</compile_context>

<pallas_src>
import functools

import jax
import jax.numpy as jnp
from jax.experimental import pallas as pl
from jax.experimental.pallas import tpu as pltpu


def _round_up(n: int, m: int) -> int:
    return ((n + m - 1) // m) * m


def _topk_router_kernel(x_ref, wt_ref, fw_ref, idx_ref, *, num_experts, matmul_dtype):
    # x_ref: (tb, Fin)   wt_ref: (Fin, E_pad)   fw_ref: (tb, E_pad)   idx_ref: (tb, K)
    x = x_ref[...].astype(matmul_dtype)
    w = wt_ref[...].astype(matmul_dtype)

    # logits = x @ w_t : contract (last dim of x, first dim of w_t).  bf16 on
    # the MXU with f32 accumulation; no transposed-RHS re-layout in-kernel.
    logits = jax.lax.dot_general(
        x, w,
        dimension_numbers=(((1,), (0,)), ((), ())),
        preferred_element_type=jnp.float32,
    )  # (tb, E_pad) f32

    tb, e_pad = fw_ref.shape
    k = idx_ref.shape[-1]

    e_iota = jax.lax.broadcasted_iota(jnp.int32, (tb, e_pad), 1)
    k_iota = jax.lax.broadcasted_iota(jnp.int32, (tb, k), 1)

    # Phantom (padding) experts must never win top-k.
    if num_experts != e_pad:
        logits = jnp.where(e_iota < num_experts, logits, -jnp.inf)

    selected = e_iota < 0                               # all-False (tb, E_pad)
    tk_idx = jnp.zeros((tb, k), dtype=jnp.int32)
    work = logits
    m_top1 = None                                       # reused as softmax max

    for i in range(k):                                  # small static K -> unrolled
        m_i = jnp.max(work, axis=-1, keepdims=True)     # (tb, 1)
        if i == 0:
            m_top1 = m_i                                # == max over all logits
        # first (lowest-index) position attaining the current max
        idx_i = jnp.min(
            jnp.where(work == m_i, e_iota, e_pad),
            axis=-1, keepdims=True,
        )                                               # (tb, 1) int32
        chosen = e_iota == idx_i                        # (tb, E_pad)
        selected = jnp.logical_or(selected, chosen)
        tk_idx = jnp.where(k_iota == i, idx_i, tk_idx)  # write slot i
        if i + 1 < k:
            work = jnp.where(chosen, -jnp.inf, work)    # remove from next pass

    # Softmax over the K selected logits, emitted directly as the dense
    # (tb, E_pad) weight map (== softmax(top_k_logits) then scatter).
    e = jnp.where(selected, jnp.exp(logits - m_top1), 0.0)
    denom = jnp.sum(e, axis=-1, keepdims=True)          # (tb, 1)
    inv = pl.reciprocal(denom, approx=False)            # one recip per row
    fw_ref[...] = (e * inv).astype(fw_ref.dtype)
    idx_ref[...] = tk_idx


def topk_router(x, route_weight, k, *, block_b=512,
                vmem_budget_bytes=48 * 1024 * 1024,
                matmul_dtype=jnp.bfloat16):
    """x: (B, Fin); route_weight: (E, Fin) -> (full_weights (B, E) f32, indices (B, k) i32)."""
    B, Fin = x.shape
    E, Fin_w = route_weight.shape
    assert Fin == Fin_w
    assert 0 < k <= E

    # Lane-dense expert axis: pad E up to a multiple of 128 (wrapper slices back).
    E_pad = _round_up(E, 128)

    # One-time wrapper-side transpose (+pad) of the small routing weight.
    w_t = route_weight.T                                # (Fin, E)
    if E_pad != E:
        w_t = jnp.pad(w_t, ((0, 0), (0, E_pad - E)))    # (Fin, E_pad)

    x_bytes = x.dtype.itemsize
    w_bytes = w_t.dtype.itemsize

    def vmem_need(tb):
        return (2 * tb * Fin * x_bytes          # x tile, double-buffered
                + Fin * E_pad * w_bytes         # weight, single-buffered
                + 2 * tb * E_pad * 4            # full_weights out, double-buffered
                + 2 * tb * k * 4)               # indices out, double-buffered

    # Batch tile: biggest that fits the budget; split into >=2 parallel grid
    # steps for larger batches so both v7x TensorCores get work.
    tb = min(block_b, _round_up(B, 8))
    if B >= 256:
        tb = min(tb, _round_up(pl.cdiv(B, 2), 128))
    elif B >= 16:
        tb = min(tb, _round_up(pl.cdiv(B, 2), 8))
    while tb > 8 and vmem_need(tb) > vmem_budget_bytes:
        tb = max(8, _round_up(tb // 2, 8))

    vmem_limit = int(max(32 << 20, min(vmem_need(tb) + (8 << 20), 64 << 20)))

    grid = (pl.cdiv(B, tb),)

    kernel = functools.partial(_topk_router_kernel,
                               num_experts=E, matmul_dtype=matmul_dtype)

    fw_padded, top_k_indices = pl.pallas_call(
        kernel,
        out_shape=(
            jax.ShapeDtypeStruct((B, E_pad), jnp.float32),
            jax.ShapeDtypeStruct((B, k), jnp.int32),
        ),
        grid=grid,
        in_specs=[
            pl.BlockSpec((tb, Fin), lambda i: (i, 0)),
            # Constant block across the grid -> single-buffer to save VMEM.
            pl.BlockSpec((Fin, E_pad), lambda i: (0, 0),
                         pipeline_mode=pl.Buffered(1)),
        ],
        out_specs=(
            pl.BlockSpec((tb, E_pad), lambda i: (i, 0)),
            pl.BlockSpec((tb, k), lambda i: (i, 0)),
        ),
        compiler_params=pltpu.CompilerParams(
            dimension_semantics=("parallel",),
            vmem_limit_bytes=vmem_limit,
        ),
    )(x, w_t)

    full_weights = fw_padded if E_pad == E else fw_padded[:, :E]
    return full_weights, top_k_indices


def init_rsqrt_uniform(key, shape, d, dtype=jnp.float32):
    # Matches torch init_rsqrt_uniform_: U(-d**-0.5, d**-0.5)
    bound = d ** (-0.5)
    return jax.random.uniform(key, shape, dtype=dtype, minval=-bound, maxval=bound)


if __name__ == "__main__":
    B, IN_F, NUM_EXPERTS, K = 8, 32, 32, 4

    key = jax.random.PRNGKey(0)
    kx, kw = jax.random.split(key, 2)

    x = jax.random.normal(kx, (B, IN_F), dtype=jnp.float32)
    route_weight = init_rsqrt_uniform(kw, (NUM_EXPERTS, IN_F), d=IN_F)

    full_weights, top_k_indices = topk_router(x, route_weight, K)
    full_weights = jax.block_until_ready(full_weights)
    top_k_indices = jax.block_until_ready(top_k_indices)

    # Reference in plain JAX with the same bf16-operand / f32-accumulation GEMM
    # (the kernel's matmul precision), then exact top-k / softmax / scatter.
    logits_ref = jax.lax.dot_general(
        x.astype(jnp.bfloat16), route_weight.astype(jnp.bfloat16),
        dimension_numbers=(((1,), (1,)), ((), ())),
        preferred_element_type=jnp.float32,
    )
    tk_vals_ref, tk_idx_ref = jax.lax.top_k(logits_ref, K)
    tk_w_ref = jax.nn.softmax(tk_vals_ref, axis=-1)
    full_ref = jnp.zeros_like(logits_ref).at[
        jnp.arange(B)[:, None], tk_idx_ref
    ].set(tk_w_ref)

    assert full_weights.shape == (B, NUM_EXPERTS)
    assert top_k_indices.shape == (B, K)
    assert jnp.allclose(full_weights, full_ref, atol=1e-5, rtol=1e-5)
    assert jnp.array_equal(top_k_indices, tk_idx_ref)

    print("KERNEL_OK")
</pallas_src>

<mosaic_0001>
module attributes {stable_mosaic.version = 11 : i64} {
  func.func @_topk_router_kernel(%arg0: i32, %arg1: memref<8x32xf32, #tpu.memory_space<vmem>>, %arg2: memref<32x128xf32, #tpu.memory_space<vmem>>, %arg3: memref<8x128xf32, #tpu.memory_space<vmem>>, %arg4: memref<8x4xi32, #tpu.memory_space<vmem>>) attributes {dimension_semantics = [#tpu.dimension_semantics<parallel>], iteration_bounds = array<i64: 1>, scalar_prefetch = 0 : i64, scratch_operands = 0 : i64, tpu.core_type = #tpu.core_type<tc>, window_params = [{transform_indices = @transform_0, window_bounds = array<i64: 8, 32>}, {pipeline_mode = #tpu.pipeline_mode<synchronous>, transform_indices = @transform_1, window_bounds = array<i64: 32, 128>}, {transform_indices = @transform_2, window_bounds = array<i64: 8, 128>}, {transform_indices = @transform_3, window_bounds = array<i64: 8, 4>}]} {
    %c0 = arith.constant 0 : index
    %c0_0 = arith.constant 0 : index
    %0 = vector.load %arg1[%c0, %c0_0] : memref<8x32xf32, #tpu.memory_space<vmem>>, vector<8x32xf32>
    %1 = arith.truncf %0 : vector<8x32xf32> to vector<8x32xbf16>
    %c0_1 = arith.constant 0 : index
    %c0_2 = arith.constant 0 : index
    %2 = vector.load %arg2[%c0_1, %c0_2] : memref<32x128xf32, #tpu.memory_space<vmem>>, vector<32x128xf32>
    %3 = arith.truncf %2 : vector<32x128xf32> to vector<32x128xbf16>
    %cst = arith.constant dense<0.000000e+00> : vector<8x128xf32>
    %4 = tpu.matmul %1, %3, %cst {dimension_numbers = #tpu.dot_dimension_numbers<[1], [0], [0], [1], [0, 0, 1, 1], [], []>} : vector<8x32xbf16>, vector<32x128xbf16>, vector<8x128xf32> -> vector<8x128xf32>
    %5 = tpu.iota {dimensions = array<i32: 1>} : vector<8x128xi32>
    %6 = tpu.iota {dimensions = array<i32: 1>} : vector<8x4xi32>
    %c32_i32 = arith.constant 32 : i32
    %7 = vector.broadcast %c32_i32 : i32 to vector<8x128xi32>
    %8 = arith.cmpi slt, %5, %7 : vector<8x128xi32>
    %cst_3 = arith.constant 0xFF800000 : f32
    %9 = vector.broadcast %cst_3 : f32 to vector<8x128xf32>
    %10 = arith.select %8, %4, %9 : vector<8x128xi1>, vector<8x128xf32>
    %c0_i32 = arith.constant 0 : i32
    %11 = vector.broadcast %c0_i32 : i32 to vector<8x128xi32>
    %12 = arith.cmpi slt, %5, %11 : vector<8x128xi32>
    %c0_i32_4 = arith.constant 0 : i32
    %13 = vector.broadcast %c0_i32_4 : i32 to vector<8x4xi32>
    %cst_5 = arith.constant dense<0xFF800000> : vector<8xf32>
    %14 = vector.multi_reduction <maximumf>, %10, %cst_5 [1] : vector<8x128xf32> to vector<8xf32>
    %15 = vector.shape_cast %14 : vector<8xf32> to vector<8x1xf32>
    %16 = vector.broadcast %15 : vector<8x1xf32> to vector<8x128xf32>
    %17 = arith.cmpf oeq, %10, %16 : vector<8x128xf32>
    %c128_i32 = arith.constant 128 : i32
    %18 = vector.broadcast %c128_i32 : i32 to vector<8x128xi32>
    %19 = arith.select %17, %5, %18 : vector<8x128xi1>, vector<8x128xi32>
    %cst_6 = arith.constant dense<2147483647> : vector<8xi32>
    %20 = vector.multi_reduction <minsi>, %19, %cst_6 [1] : vector<8x128xi32> to vector<8xi32>
    %21 = vector.shape_cast %20 : vector<8xi32> to vector<8x1xi32>
    %22 = vector.broadcast %21 : vector<8x1xi32> to vector<8x128xi32>
    %23 = arith.cmpi eq, %5, %22 : vector<8x128xi32>
    %24 = arith.ori %12, %23 : vector<8x128xi1>
    %c0_i32_7 = arith.constant 0 : i32
    %25 = vector.broadcast %c0_i32_7 : i32 to vector<8x4xi32>
    %26 = arith.cmpi eq, %6, %25 : vector<8x4xi32>
    %27 = vector.shape_cast %21 : vector<8x1xi32> to vector<8x1xi32>
    %28 = vector.broadcast %27 : vector<8x1xi32> to vector<8x4xi32>
    %29 = arith.select %26, %28, %13 : vector<8x4xi1>, vector<8x4xi32>
    %cst_8 = arith.constant 0xFF800000 : f32
    %30 = vector.broadcast %cst_8 : f32 to vector<8x128xf32>
    %31 = arith.select %23, %30, %10 : vector<8x128xi1>, vector<8x128xf32>
    %cst_9 = arith.constant dense<0xFF800000> : vector<8xf32>
    %32 = vector.multi_reduction <maximumf>, %31, %cst_9 [1] : vector<8x128xf32> to vector<8xf32>
    %33 = vector.shape_cast %32 : vector<8xf32> to vector<8x1xf32>
    %34 = vector.broadcast %33 : vector<8x1xf32> to vector<8x128xf32>
    %35 = arith.cmpf oeq, %31, %34 : vector<8x128xf32>
    %c128_i32_10 = arith.constant 128 : i32
    %36 = vector.broadcast %c128_i32_10 : i32 to vector<8x128xi32>
    %37 = arith.select %35, %5, %36 : vector<8x128xi1>, vector<8x128xi32>
    %cst_11 = arith.constant dense<2147483647> : vector<8xi32>
    %38 = vector.multi_reduction <minsi>, %37, %cst_11 [1] : vector<8x128xi32> to vector<8xi32>
    %39 = vector.shape_cast %38 : vector<8xi32> to vector<8x1xi32>
    %40 = vector.broadcast %39 : vector<8x1xi32> to vector<8x128xi32>
    %41 = arith.cmpi eq, %5, %40 : vector<8x128xi32>
    %42 = arith.ori %24, %41 : vector<8x128xi1>
    %c1_i32 = arith.constant 1 : i32
    %43 = vector.broadcast %c1_i32 : i32 to vector<8x4xi32>
    %44 = arith.cmpi eq, %6, %43 : vector<8x4xi32>
    %45 = vector.shape_cast %39 : vector<8x1xi32> to vector<8x1xi32>
    %46 = vector.broadcast %45 : vector<8x1xi32> to vector<8x4xi32>
    %47 = arith.select %44, %46, %29 : vector<8x4xi1>, vector<8x4xi32>
    %cst_12 = arith.constant 0xFF800000 : f32
    %48 = vector.broadcast %cst_12 : f32 to vector<8x128xf32>
    %49 = arith.select %41, %48, %31 : vector<8x128xi1>, vector<8x128xf32>
    %cst_13 = arith.constant dense<0xFF800000> : vector<8xf32>
    %50 = vector.multi_reduction <maximumf>, %49, %cst_13 [1] : vector<8x128xf32> to vector<8xf32>
    %51 = vector.shape_cast %50 : vector<8xf32> to vector<8x1xf32>
    %52 = vector.broadcast %51 : vector<8x1xf32> to vector<8x128xf32>
    %53 = arith.cmpf oeq, %49, %52 : vector<8x128xf32>
    %c128_i32_14 = arith.constant 128 : i32
    %54 = vector.broadcast %c128_i32_14 : i32 to vector<8x128xi32>
    %55 = arith.select %53, %5, %54 : vector<8x128xi1>, vector<8x128xi32>
    %cst_15 = arith.constant dense<2147483647> : vector<8xi32>
    %56 = vector.multi_reduction <minsi>, %55, %cst_15 [1] : vector<8x128xi32> to vector<8xi32>
    %57 = vector.shape_cast %56 : vector<8xi32> to vector<8x1xi32>
    %58 = vector.broadcast %57 : vector<8x1xi32> to vector<8x128xi32>
    %59 = arith.cmpi eq, %5, %58 : vector<8x128xi32>
    %60 = arith.ori %42, %59 : vector<8x128xi1>
    %c2_i32 = arith.constant 2 : i32
    %61 = vector.broadcast %c2_i32 : i32 to vector<8x4xi32>
    %62 = arith.cmpi eq, %6, %61 : vector<8x4xi32>
    %63 = vector.shape_cast %57 : vector<8x1xi32> to vector<8x1xi32>
    %64 = vector.broadcast %63 : vector<8x1xi32> to vector<8x4xi32>
    %65 = arith.select %62, %64, %47 : vector<8x4xi1>, vector<8x4xi32>
    %cst_16 = arith.constant 0xFF800000 : f32
    %66 = vector.broadcast %cst_16 : f32 to vector<8x128xf32>
    %67 = arith.select %59, %66, %49 : vector<8x128xi1>, vector<8x128xf32>
    %cst_17 = arith.constant dense<0xFF800000> : vector<8xf32>
    %68 = vector.multi_reduction <maximumf>, %67, %cst_17 [1] : vector<8x128xf32> to vector<8xf32>
    %69 = vector.shape_cast %68 : vector<8xf32> to vector<8x1xf32>
    %70 = vector.broadcast %69 : vector<8x1xf32> to vector<8x128xf32>
    %71 = arith.cmpf oeq, %67, %70 : vector<8x128xf32>
    %c128_i32_18 = arith.constant 128 : i32
    %72 = vector.broadcast %c128_i32_18 : i32 to vector<8x128xi32>
    %73 = arith.select %71, %5, %72 : vector<8x128xi1>, vector<8x128xi32>
    %cst_19 = arith.constant dense<2147483647> : vector<8xi32>
    %74 = vector.multi_reduction <minsi>, %73, %cst_19 [1] : vector<8x128xi32> to vector<8xi32>
    %75 = vector.shape_cast %74 : vector<8xi32> to vector<8x1xi32>
    %76 = vector.broadcast %75 : vector<8x1xi32> to vector<8x128xi32>
    %77 = arith.cmpi eq, %5, %76 : vector<8x128xi32>
    %78 = arith.ori %60, %77 : vector<8x128xi1>
    %c3_i32 = arith.constant 3 : i32
    %79 = vector.broadcast %c3_i32 : i32 to vector<8x4xi32>
    %80 = arith.cmpi eq, %6, %79 : vector<8x4xi32>
    %81 = vector.shape_cast %75 : vector<8x1xi32> to vector<8x1xi32>
    %82 = vector.broadcast %81 : vector<8x1xi32> to vector<8x4xi32>
    %83 = arith.select %80, %82, %65 : vector<8x4xi1>, vector<8x4xi32>
    %84 = vector.broadcast %15 : vector<8x1xf32> to vector<8x128xf32>
    %85 = arith.subf %10, %84 : vector<8x128xf32>
    %86 = math.exp %85 : vector<8x128xf32>
    %cst_20 = arith.constant 0.000000e+00 : f32
    %87 = vector.broadcast %cst_20 : f32 to vector<8x128xf32>
    %88 = arith.select %78, %86, %87 : vector<8x128xi1>, vector<8x128xf32>
    %cst_21 = arith.constant dense<0.000000e+00> : vector<8xf32>
    %89 = vector.multi_reduction <add>, %88, %cst_21 [1] : vector<8x128xf32> to vector<8xf32>
    %90 = vector.shape_cast %89 : vector<8xf32> to vector<8x1xf32>
    %91 = tpu.reciprocal %90 : vector<8x1xf32> -> vector<8x1xf32>
    %92 = vector.broadcast %91 : vector<8x1xf32> to vector<8x128xf32>
    %93 = arith.mulf %88, %92 : vector<8x128xf32>
    %c0_22 = arith.constant 0 : index
    %c0_23 = arith.constant 0 : index
    %94 = vector.load %arg3[%c0_22, %c0_23] : memref<8x128xf32, #tpu.memory_space<vmem>>, vector<8x128xf32>
    tpu.vector_store %arg3[%c0_22, %c0_23], %93 {strides = array<i32>} : memref<8x128xf32, #tpu.memory_space<vmem>>, vector<8x128xf32>,
    %c0_24 = arith.constant 0 : index
    %c0_25 = arith.constant 0 : index
    %95 = vector.load %arg4[%c0_24, %c0_25] : memref<8x4xi32, #tpu.memory_space<vmem>>, vector<8x4xi32>
    tpu.vector_store %arg4[%c0_24, %c0_25], %83 {strides = array<i32>} : memref<8x4xi32, #tpu.memory_space<vmem>>, vector<8x4xi32>,
    return
  }
  func.func @transform_0(%arg0: i32) -> (i32, i32) {
    %c0_i32 = arith.constant 0 : i32
    %c0_i32_0 = arith.constant 0 : i32
    return %arg0, %c0_i32 : i32, i32
  }
  func.func @transform_1(%arg0: i32) -> (i32, i32) {
    %c0_i32 = arith.constant 0 : i32
    %c0_i32_0 = arith.constant 0 : i32
    %c0_i32_1 = arith.constant 0 : i32
    return %c0_i32, %c0_i32_0 : i32, i32
  }
  func.func @transform_2(%arg0: i32) -> (i32, i32) {
    %c0_i32 = arith.constant 0 : i32
    %c0_i32_0 = arith.constant 0 : i32
    return %arg0, %c0_i32 : i32, i32
  }
  func.func @transform_3(%arg0: i32) -> (i32, i32) {
    %c0_i32 = arith.constant 0 : i32
    %c0_i32_0 = arith.constant 0 : i32
    return %arg0, %c0_i32 : i32, i32
  }
}

</mosaic_0001>

<bundles_post_ra>
// kernel: tpu_custom_call.1
= control target key start
LH: loop header
LB: loop body
LE: loop exit
PB: predicated region body
PF: predicated region fallthrough
CT: control target
= control target key end

     0   :  { %9 = vsyncpa [#allocation3], 0  ;;  %s427_s0 = inlined_call_operand.hbm [shape: f32[8,32], index: 0, kind: input, shape index: {}]   ;;  %s428_s1 = inlined_call_operand.hbm [shape: f32[32,128], index: 1, kind: input, shape index: {}]   ;;  %s429_s2 = inlined_call_operand.hbm [shape: f32[8,128], index: 2, kind: output, shape index: {0}]   ;;  %s430_s3 = inlined_call_operand.vmem [shape: s32[8,4], index: 3, kind: output, shape index: {1}]  }
   0x1   :  { %10 = vsyncpa [#allocation6], 0 }
   0x2   :  { %11 = vsyncpa [#allocation4], 0  ;;  %s315_s12 = smov [#allocation2]   ;;  %s316_s14 = smov [#allocation5]  }
   0x3   :  { %s18_s13 = sshll.u32 %s315_s12, 4  ;;  %s27_s15 = sshll.u32 %s316_s14, 4  ;;  %s19_s13 = int_to_ptr.vmem [resolvable:$true] %s18_s13  ;;  %s342_s15 = int_to_ptr.vmem [resolvable:$true] %s27_s15 }
   0x4   :  { %s243_s18 = scalar_lea.hbm %s427_s0, 128 }
   0x5   :  { %p244_p0 = scmp.ne.s32.totalorder %s427_s0, %s243_s18  ;;  %p247_p1 = scmp.lt.u32.totalorder %s243_s18, %s427_s0 }
   0x7   :  { %p249_p2 = pnand %p247_p1, %p244_p0 }
   0x9   :  { %252 = shalt.err (!%p249_p2)
}
   0xa   :  { %s253_s23 = scalar_lea.vmem %s19_s13, 128  ;;  %p258_p4 = scmp.lt.s32.totalorder %s19_s13, %s19_s13 }
   0xb   :  { %p254_p3 = scmp.ne.s32.totalorder %s19_s13, %s253_s23  ;;  %p259_p5 = scmp.lt.s32.totalorder %s253_s23, %s253_s23 }
   0xd   :  { %p260_p6 = por %p259_p5, %p258_p4 }
   0xf   :  { %p261_p7 = pnand %p260_p6, %p254_p3 }
  0x11   :  { %264 = shalt.err (!%p261_p7)
}
  0x12   :  { %21 = dma.hbm_to_vmem [thread:$0]  %s427_s0, 128, %s19_s13, [#allocation3]  }
  0x13   :  { %s265_s28 = scalar_lea.hbm %s428_s1, 512 }
  0x14   :  { %p266_p8 = scmp.ne.s32.totalorder %s428_s1, %s265_s28  ;;  %p269_p9 = scmp.lt.u32.totalorder %s265_s28, %s428_s1 }
  0x16   :  { %p271_p10 = pnand %p269_p9, %p266_p8 }
  0x18   :  { %274 = shalt.err (!%p271_p10)
}
  0x19   :  { %s275_s6 = scalar_lea.vmem %s342_s15, 512  ;;  %p280_p12 = scmp.lt.s32.totalorder %s342_s15, %s342_s15 }
  0x1a   :  { %p276_p11 = scmp.ne.s32.totalorder %s342_s15, %s275_s6  ;;  %p281_p13 = scmp.lt.s32.totalorder %s275_s6, %s275_s6 }
  0x1c   :  { %p282_p0 = por %p281_p13, %p280_p12 }
  0x1e   :  { %p283_p1 = pnand %p282_p0, %p276_p11 }
  0x20   :  { %286 = shalt.err (!%p283_p1)
}
  0x21   :  { %s317_s0 = smov 128   ;;  %s318_s7 = smov 8  }
  0x22   :  { %33 = dma.hbm_to_vmem [thread:$0]  %s428_s1, 512, %s342_s15, [#allocation6], %s317_s0, %s317_s0, %s318_s7  }
  0x23   :  { %309 = dma.done.wait [#allocation3], 128  }
  0x24   :  { %310 = vsyncadd [#allocation3], 4294967168 }
  0x25   :  { %311 = dma.done.wait [#allocation6], 512  }
  0x26   :  { %312 = vsyncadd [#allocation6], 4294966784  ;;  %v319_v0 = vmov 0.0   ;;  %vm320_vm0 = vmmov 0   ;;  %v43_v1 = vld [vmem:[#allocation5] sm:$0xff]  ;;  %v44_v2 = vld [vmem:[#allocation5 + $0x8] sm:$0xff]  ;;  %v93_v9 = vlaneseq }
  0x27   :  { %224 = vmatprep.subr.bf16.mxu0 %v319_v0  ;;  %228 = vmatprep.mubr.msk.bf16.mxu0 %vm320_vm0, %v319_v0  ;;  %v45_v3 = vld [vmem:[#allocation5 + $0x10] sm:$0xff]  ;;  %v47_v4 = vpack.c.bf16 %v44_v2, %v43_v1  ;;  %v46_v5 = vld [vmem:[#allocation5 + $0x18] sm:$0xff]  ;;  %vm49_vm1 = vcmask 261120   ;;  %s321_s11 = smov [#allocation7]  }
  0x28   :  { %v48_v6 = vpack.c.bf16 %v46_v5, %v45_v3  ;;  %v41_v7 = vld [vmem:[#allocation2] sm:$0xff]  ;;  %v373_v10 = vand.u32 127, %v93_v9  ;;  %s206_s12 = sshll.u32 %s321_s11, 4  ;;  %s207_s12 = int_to_ptr.vmem [resolvable:$true] %s206_s12 }
  0x29   :  { %225 = vmatpush3.bf16.msra.mxu0 %v47_v4  ;;  %v42_v8 = vpack.c.bf16 %v41_v7, %v41_v7  ;;  %s287_s13 = scalar_lea.vmem %s207_s12, 128  ;;  %p292_p3 = scmp.lt.s32.totalorder %s207_s12, %s207_s12 }
  0x2a   :  { %226 = vmatprep.subr.bf16.mxu0 %v319_v0  ;;  %vm95_vm2 = vcmp.lt.s32.totalorder %v373_v10, 32  ;;  %vm118_vm8 = vcmp.eq.s32.totalorder %v373_v10, 0  ;;  %vm141_vm9 = vcmp.eq.s32.totalorder %v373_v10, 1  ;;  %vm164_vm13 = vcmp.eq.s32.totalorder %v373_v10, 2  ;;  %p288_p2 = scmp.ne.s32.totalorder %s207_s12, %s287_s13  ;;  %p293_p4 = scmp.lt.s32.totalorder %s287_s13, %s287_s13 }
  0x2c   :  { %p294_p5 = por %p293_p4, %p292_p3 }
  0x2d   :  { %227 = vmatpush3.bf16.msra.mxu0 %v48_v6 }
  0x2e   :  { %p295_p6 = pnand %p294_p5, %p288_p2 }
  0x30   :  { %229 = vmatmul.mubr.msk.bf16.vlgmr.msra.gmra.mrb[0].mxu0 %vm49_vm1, %v42_v8 }
 0x103   :  { %v87_v11 = vpop.f32.mrb[0].mxu0 }
 0x104   :  { %v376_v12 = vsel %vm95_vm2, %v87_v11, -inf  ;;  %v230_v13 = vpop.f32.mrb[1].mxu0 }
 0x105   :  { %98 = vmax.xlane.f32.xlu0 %v376_v12  ;;  %v90_v14 = vpop.f32.mrb[2].mxu0 }
 0x106   :  { %v231_v15 = vpop.f32.mrb[3].mxu0 }
 0x192   :  { %v379_v16 = vpop.xlane.xlu0 %98 }
 0x193   :  { %vm100_vm3 = vcmp.eq.f32.partialorder %v376_v12, %v379_v16  ;;  %v189_v6 = vsub.f32 %v376_v12, %v379_v16 }
 0x194   :  { %v101_v17 = vsel %vm100_vm3, %v373_v10, 128  ;;  %vm187_vm3 = vcmp.eq.s32.totalorder %v373_v10, 3 }
 0x195   :  { %v103_v18 = vshra.s32 %v101_v17, 16  ;;  %v102_v20 = vand.u32 65535, %v101_v17  ;;  %v190_v7 = vmul.f32 1.442695, %v189_v6 }
 0x197   :  { %v105_v19 = vcvt.s32.f32 %v103_v18  ;;  %v104_v22 = vcvt.s32.f32 %v102_v20  ;;  %239 = vpow2.f32 %v190_v7 }
 0x199   :  { %106 = vmin.xlane.f32.xlu0 %v105_v19 }
 0x1a1   :  { %v240_v17 = vpop.eup %239 }
 0x226   :  { %v107_v21 = vpop.xlane.xlu0 %106 }
 0x227   :  { %vm108_vm4 = vcmp.eq.f32.partialorder %v105_v19, %v107_v21  ;;  %v113_v24 = vcvt.f32.s32 %v107_v21 }
 0x228   :  { %v109_v23 = vsel %vm108_vm4, %v104_v22, inf  ;;  %vm198_vm4 = vcmask 31744  }
 0x229   :  { %110 = vmin.xlane.f32.xlu1 %v109_v23  ;;  %v114_v26 = vshll.u32 %v113_v24, 16 }
 0x2b6   :  { %v111_v25 = vpop.xlane.xlu1 %110 }
 0x2b7   :  { %v112_v27 = vcvt.f32.s32 %v111_v25 }
 0x2b9   :  { %v115_v28 = vadd.s32 %v114_v26, %v112_v27 }
 0x2bb   :  { %vm116_vm5 = vcmp.eq.s32.totalorder %v373_v10, %v115_v28  ;;  %v119_v43 = vsel %vm118_vm8, %v115_v28, 0 }
 0x2bc   :  { %v120_v29 = vsel %vm116_vm5, -inf, %v376_v12 }
 0x2bd   :  { %121 = vmax.xlane.f32.xlu1 %v120_v29 }
 0x34a   :  { %v122_v30 = vpop.xlane.xlu1 %121 }
 0x34b   :  { %vm123_vm6 = vcmp.eq.f32.partialorder %v120_v29, %v122_v30 }
 0x34c   :  { %v124_v31 = vsel %vm123_vm6, %v373_v10, 128 }
 0x34d   :  { %v126_v32 = vshra.s32 %v124_v31, 16  ;;  %v125_v34 = vand.u32 65535, %v124_v31 }
 0x34f   :  { %v128_v33 = vcvt.s32.f32 %v126_v32  ;;  %v127_v36 = vcvt.s32.f32 %v125_v34 }
 0x351   :  { %129 = vmin.xlane.f32.xlu0 %v128_v33 }
 0x3de   :  { %v130_v35 = vpop.xlane.xlu0 %129 }
 0x3df   :  { %vm131_vm7 = vcmp.eq.f32.partialorder %v128_v33, %v130_v35  ;;  %v136_v38 = vcvt.f32.s32 %v130_v35 }
 0x3e0   :  { %v132_v37 = vsel %vm131_vm7, %v127_v36, inf }
 0x3e1   :  { %133 = vmin.xlane.f32.xlu1 %v132_v37  ;;  %v137_v40 = vshll.u32 %v136_v38, 16 }
 0x46e   :  { %v134_v39 = vpop.xlane.xlu1 %133 }
 0x46f   :  { %v135_v41 = vcvt.f32.s32 %v134_v39 }
 0x471   :  { %v138_v42 = vadd.s32 %v137_v40, %v135_v41 }
 0x473   :  { %v142_v44 = vsel %vm141_vm9, %v138_v42, %v119_v43  ;;  %vm139_vm10 = vcmp.eq.s32.totalorder %v373_v10, %v138_v42 }
 0x474   :  { %v143_v45 = vsel %vm139_vm10, -inf, %v120_v29  ;;  %vm140_vm15 = vmor %vm116_vm5, %vm139_vm10 }
 0x475   :  { %144 = vmax.xlane.f32.xlu0 %v143_v45 }
 0x502   :  { %v145_v46 = vpop.xlane.xlu0 %144 }
 0x503   :  { %vm146_vm11 = vcmp.eq.f32.partialorder %v143_v45, %v145_v46 }
 0x504   :  { %v147_v47 = vsel %vm146_vm11, %v373_v10, 128 }
 0x505   :  { %v149_v48 = vshra.s32 %v147_v47, 16  ;;  %v148_v50 = vand.u32 65535, %v147_v47 }
 0x507   :  { %v151_v49 = vcvt.s32.f32 %v149_v48  ;;  %v150_v52 = vcvt.s32.f32 %v148_v50 }
 0x509   :  { %152 = vmin.xlane.f32.xlu1 %v151_v49 }
 0x596   :  { %v153_v51 = vpop.xlane.xlu1 %152 }
 0x597   :  { %vm154_vm12 = vcmp.eq.f32.partialorder %v151_v49, %v153_v51  ;;  %v159_v54 = vcvt.f32.s32 %v153_v51 }
 0x598   :  { %v155_v53 = vsel %vm154_vm12, %v150_v52, inf }
 0x599   :  { %156 = vmin.xlane.f32.xlu0 %v155_v53  ;;  %v160_v56 = vshll.u32 %v159_v54, 16 }
 0x626   :  { %v157_v55 = vpop.xlane.xlu0 %156 }
 0x627   :  { %v158_v57 = vcvt.f32.s32 %v157_v55 }
 0x629   :  { %v161_v58 = vadd.s32 %v160_v56, %v158_v57 }
 0x62b   :  { %v165_v59 = vsel %vm164_vm13, %v161_v58, %v142_v44  ;;  %vm162_vm14 = vcmp.eq.s32.totalorder %v373_v10, %v161_v58 }
 0x62c   :  { %v166_v60 = vsel %vm162_vm14, -inf, %v143_v45  ;;  %vm401_vm0 = vmor %vm140_vm15, %vm162_vm14 }
 0x62d   :  { %167 = vmax.xlane.f32.xlu1 %v166_v60 }
 0x6ba   :  { %v168_v62 = vpop.xlane.xlu1 %167 }
 0x6bb   :  { %vm169_vm1 = vcmp.eq.f32.partialorder %v166_v60, %v168_v62 }
 0x6bc   :  { %v170_v63 = vsel %vm169_vm1, %v373_v10, 128 }
 0x6bd   :  { %v172_v0 = vshra.s32 %v170_v63, 16  ;;  %v171_v2 = vand.u32 65535, %v170_v63 }
 0x6bf   :  { %v174_v1 = vcvt.s32.f32 %v172_v0  ;;  %v173_v4 = vcvt.s32.f32 %v171_v2 }
 0x6c1   :  { %175 = vmin.xlane.f32.xlu0 %v174_v1 }
 0x74e   :  { %v176_v3 = vpop.xlane.xlu0 %175 }
 0x74f   :  { %vm177_vm2 = vcmp.eq.f32.partialorder %v174_v1, %v176_v3  ;;  %v182_v8 = vcvt.f32.s32 %v176_v3 }
 0x750   :  { %v178_v5 = vsel %vm177_vm2, %v173_v4, inf }
 0x751   :  { %179 = vmin.xlane.f32.xlu1 %v178_v5  ;;  %v183_v11 = vshll.u32 %v182_v8, 16 }
 0x7de   :  { %v180_v9 = vpop.xlane.xlu1 %179 }
 0x7df   :  { %v181_v13 = vcvt.f32.s32 %v180_v9 }
 0x7e1   :  { %v184_v14 = vadd.s32 %v183_v11, %v181_v13 }
 0x7e3   :  { %v188_v15 = vsel %vm187_vm3, %v184_v14, %v165_v59  ;;  %vm185_vm5 = vcmp.eq.s32.totalorder %v373_v10, %v184_v14 }
 0x7e4   :  { %199 = vst.msk [vmem:[%s430_s3] sm:$0xff] %vm198_vm4, %v188_v15  ;;  %vm186_vm6 = vmor %vm401_vm0, %vm185_vm5 }
 0x7e5   :  { %v192_v12 = vsel %vm186_vm6, %v240_v17, 0.0 }
 0x7e6   :  { %193 = vadd.xlane.f32.xlu0 %v192_v12 }
 0x873   :  { %v194_v16 = vpop.xlane.xlu0 %193 }
 0x874   :  { %241 = vrcp.f32 %v194_v16 }
 0x87e   :  { %v242_v18 = vpop.eup %241 }
 0x87f   :  { %v196_v19 = vmul.f32 %v242_v18, %v192_v12 }
 0x881   :  { %197 = vst [vmem:[#allocation7] sm:$0xff] %v196_v19 }
 0x882   :  { %298 = shalt.err (!%p295_p6)
}
 0x883   :  { %s299_s15 = scalar_lea.hbm %s429_s2, 128 }
 0x884   :  { %p300_p7 = scmp.ne.s32.totalorder %s429_s2, %s299_s15  ;;  %p303_p8 = scmp.lt.u32.totalorder %s299_s15, %s429_s2 }
 0x886   :  { %p305_p9 = pnand %p303_p8, %p300_p7 }
 0x888   :  { %308 = shalt.err (!%p305_p9)
}
 0x889   :  { %209 = dma.vmem_to_hbm [thread:$0]  %s207_s12, 128, %s429_s2, [#allocation4]  }
 0x88a   :  { %313 = dma.done.wait [#allocation4], 128  }
 0x88b   :  { %314 = vsyncadd [#allocation4], 4294967168 }
 0x88c   :  { %217 = vsyncpa [#allocation3], 1 }
 0x88d   :  { %218 = vsyncpa [#allocation6], 1 }
 0x88e   :  { %219 = vsyncpa [#allocation4], 1 }

</bundles_post_ra>
